<compile_context>
chip_gen: v7x
topology: tpu7x:2x2x1
jax: 0.10.0
libtpu: 0.0.40
codegen_flags: <defaults>
</compile_context>

<pallas_src>
import jax
import jax.numpy as jnp
from jax.experimental import pallas as pl
from jax.experimental.pallas import tpu as pltpu


def _round_up(x, m):
    return (x + m - 1) // m * m


def set2set_lstm_kernel(h_ref, m_ref, w_ref, b_ref, h_out_ref, m_out_ref):
    # h_ref: [tN, 2D] (native dtype), m_ref: [tN, D] (native dtype),
    # w_ref: [2D, 4D] bf16 (VMEM-resident), b_ref: [1, 4D] f32,
    # h_out_ref: [tN, D] hidden.dtype, m_out_ref: [tN, D] memory.dtype.
    D = m_ref.shape[-1]

    # Fused gate matmul on the MXU: bf16 operands (cast rides idle VPU slots;
    # DMA is the binding resource), f32 accumulation + f32 epilogue (v5e has
    # no bf16 VPU/EUP).
    gates = jnp.dot(h_ref[...].astype(jnp.bfloat16), w_ref[...],
                    preferred_element_type=jnp.float32) + b_ref[...]

    # Transcendentals only where needed: 3 sigmoid gates + 1 tanh candidate.
    sig = jax.nn.sigmoid(gates[:, :3 * D])
    ct = jnp.tanh(gates[:, 3 * D:])          # candidate (memory) gate
    ft = sig[:, 0 * D:1 * D]                 # forget gate
    it = sig[:, 1 * D:2 * D]                 # input gate
    ot = sig[:, 2 * D:3 * D]                 # output gate

    m_f32 = m_ref[...].astype(jnp.float32)
    new_m = ft * m_f32 + it * ct
    new_h = ot * jnp.tanh(new_m)

    # Direct stores into the two output blocks (no concat temp).
    h_out_ref[...] = new_h.astype(h_out_ref.dtype)
    m_out_ref[...] = new_m.astype(m_out_ref.dtype)


def set2set_lstm(hidden, memory, w_cat, b_cat, *, row_tile=512):
    """hidden: [N, 2D], memory: [N, D], w_cat: [2D, 4D], b_cat: [1, 4D].

    Returns (new_hidden [N, D], new_memory [N, D]) in the input dtypes.
    Note: if the caller carries the cell state across Set2Set steps, it should
    be kept in f32 (memory.dtype == float32) to avoid compounding error.
    """
    N, D = memory.shape
    assert hidden.shape == (N, 2 * D)
    assert w_cat.shape == (2 * D, 4 * D)
    assert b_cat.shape == (1, 4 * D)

    # Pre-cast the (tiny) parameters once per call.  In a readout recurrence,
    # hoist these casts out of the step loop entirely (they are no-ops here if
    # the caller already passes bf16 weights / f32 bias).
    w_bf = w_cat if w_cat.dtype == jnp.bfloat16 else w_cat.astype(jnp.bfloat16)
    b_f = b_cat if b_cat.dtype == jnp.float32 else b_cat.astype(jnp.float32)

    # Row tile: multiple of 8 sublanes, capped at row_tile (roofline) and at
    # ceil(N/2) so the grid has >= 2 steps whenever possible (two-TC sharding
    # on v7x).  No explicit padding: ragged last block is handled by Pallas.
    half = _round_up(pl.cdiv(N, 2), 8)
    tile_n = max(8, min(row_tile, half))
    grid = (pl.cdiv(N, tile_n),)

    h_bytes = hidden.dtype.itemsize
    m_bytes = memory.dtype.itemsize
    cost = pl.CostEstimate(
        flops=2 * N * (2 * D) * (4 * D) + 6 * N * D,
        transcendentals=5 * N * D,
        bytes_accessed=(N * 2 * D * h_bytes        # hidden in
                        + N * D * m_bytes          # memory in
                        + 2 * D * 4 * D * 2        # weights (bf16)
                        + 4 * D * 4                # bias (f32)
                        + N * D * h_bytes          # new_hidden out
                        + N * D * m_bytes),        # new_memory out
    )

    h_out, m_out = pl.pallas_call(
        set2set_lstm_kernel,
        out_shape=(jax.ShapeDtypeStruct((N, D), hidden.dtype),
                   jax.ShapeDtypeStruct((N, D), memory.dtype)),
        grid_spec=pltpu.PrefetchScalarGridSpec(
            num_scalar_prefetch=0,
            grid=grid,
            in_specs=[
                pl.BlockSpec((tile_n, 2 * D), lambda i: (i, 0)),   # hidden rows
                pl.BlockSpec((tile_n, D), lambda i: (i, 0)),       # memory rows
                pl.BlockSpec((2 * D, 4 * D), lambda i: (0, 0)),    # weights: resident
                pl.BlockSpec((1, 4 * D), lambda i: (0, 0)),        # bias: resident
            ],
            out_specs=(
                pl.BlockSpec((tile_n, D), lambda i: (i, 0)),       # new_hidden
                pl.BlockSpec((tile_n, D), lambda i: (i, 0)),       # new_memory
            ),
        ),
        compiler_params=pltpu.CompilerParams(
            dimension_semantics=("parallel",)),     # megacore sharding on v7x
        cost_estimate=cost,
    )(hidden, memory, w_bf, b_f)

    return h_out, m_out


def xavier_uniform(key, fan_in, fan_out, dtype=jnp.float32):
    # Matches torch.nn.init.xavier_uniform_ for a Linear weight of shape
    # (out_features, in_features); generated transposed as (in, out).
    limit = (6.0 / (fan_in + fan_out)) ** 0.5
    return jax.random.uniform(key, (fan_in, fan_out), dtype=dtype,
                              minval=-limit, maxval=limit)


def _epilogue(gates, memory, D):
    ft = jax.nn.sigmoid(gates[:, 0 * D:1 * D])
    it = jax.nn.sigmoid(gates[:, 1 * D:2 * D])
    ot = jax.nn.sigmoid(gates[:, 2 * D:3 * D])
    ct = jnp.tanh(gates[:, 3 * D:4 * D])
    new_m = ft * memory + it * ct
    return ot * jnp.tanh(new_m), new_m


def reference_f32(hidden, memory, w_cat, b_cat):
    D = memory.shape[-1]
    gates = hidden @ w_cat + b_cat
    return _epilogue(gates, memory, D)


def reference_bf16_matmul(hidden, memory, w_cat, b_cat):
    # Same bf16-operand / f32-accumulate matmul as the kernel.
    D = memory.shape[-1]
    gates = jnp.dot(hidden.astype(jnp.bfloat16), w_cat.astype(jnp.bfloat16),
                    preferred_element_type=jnp.float32) + b_cat
    return _epilogue(gates, memory, D)


def run_case(key, N, D):
    k_h, k_m, k_f, k_i, k_o, k_c = jax.random.split(key, 6)
    hidden = jax.random.normal(k_h, (N, 2 * D), dtype=jnp.float32)
    memory = jax.random.normal(k_m, (N, D), dtype=jnp.float32)

    # Deterministic xavier-uniform weights (biases zero, as in _init_param).
    # Gate order: forget, input, output, memory.
    w_f = xavier_uniform(k_f, 2 * D, D)
    w_i = xavier_uniform(k_i, 2 * D, D)
    w_o = xavier_uniform(k_o, 2 * D, D)
    w_c = xavier_uniform(k_c, 2 * D, D)
    w_cat = jnp.concatenate([w_f, w_i, w_o, w_c], axis=1)   # [2D, 4D]
    b_cat = jnp.zeros((1, 4 * D), dtype=jnp.float32)         # [1, 4D]

    h_out, m_out = set2set_lstm(hidden, memory, w_cat, b_cat)
    jax.block_until_ready((h_out, m_out))

    # Tight check against a reference using the same bf16-matmul numerics.
    h_bf, m_bf = reference_bf16_matmul(hidden, memory, w_cat, b_cat)
    assert jnp.allclose(h_out, h_bf, atol=5e-3, rtol=5e-3), "hidden (bf16 ref)"
    assert jnp.allclose(m_out, m_bf, atol=5e-3, rtol=5e-3), "memory (bf16 ref)"

    # Loose check against the pure-f32 module semantics (bf16 MXU quant error).
    h_32, m_32 = reference_f32(hidden, memory, w_cat, b_cat)
    assert jnp.allclose(h_out, h_32, atol=1e-1, rtol=1e-1), "hidden (f32 ref)"
    assert jnp.allclose(m_out, m_32, atol=1e-1, rtol=1e-1), "memory (f32 ref)"


if __name__ == "__main__":
    key = jax.random.PRNGKey(0)
    k_small, k_ragged, k_big = jax.random.split(key, 3)

    # Small shape consistent with the module's forward (N sets, hidden_dim D).
    run_case(k_small, N=8, D=32)
    # Non-multiple-of-tile N exercises the ragged-last-block (masked OOB) path.
    run_case(k_ragged, N=13, D=32)
    # Batched case exercises the 2-step row-tiled grid (tile_n=256), the
    # VMEM-resident weights, and the direct two-output stores.
    run_case(k_big, N=512, D=64)

    print("KERNEL_OK")
</pallas_src>

<mosaic_0001>
module attributes {stable_mosaic.version = 11 : i64} {
  func.func @set2set_lstm_kernel(%arg0: i32, %arg1: memref<8x64xf32, #tpu.memory_space<vmem>>, %arg2: memref<8x32xf32, #tpu.memory_space<vmem>>, %arg3: memref<64x128xbf16, #tpu.memory_space<vmem>>, %arg4: memref<1x128xf32, #tpu.memory_space<vmem>>, %arg5: memref<8x32xf32, #tpu.memory_space<vmem>>, %arg6: memref<8x32xf32, #tpu.memory_space<vmem>>) attributes {dimension_semantics = [#tpu.dimension_semantics<parallel>], iteration_bounds = array<i64: 1>, scalar_prefetch = 0 : i64, scratch_operands = 0 : i64, tpu.core_type = #tpu.core_type<tc>, window_params = [{transform_indices = @transform_0, window_bounds = array<i64: 8, 64>}, {transform_indices = @transform_1, window_bounds = array<i64: 8, 32>}, {pipeline_mode = #tpu.pipeline_mode<synchronous>, transform_indices = @transform_2, window_bounds = array<i64: 64, 128>}, {pipeline_mode = #tpu.pipeline_mode<synchronous>, transform_indices = @transform_3, window_bounds = array<i64: 1, 128>}, {transform_indices = @transform_4, window_bounds = array<i64: 8, 32>}, {transform_indices = @transform_5, window_bounds = array<i64: 8, 32>}]} {
    %c0 = arith.constant 0 : index
    %c0_0 = arith.constant 0 : index
    %0 = vector.load %arg1[%c0, %c0_0] : memref<8x64xf32, #tpu.memory_space<vmem>>, vector<8x64xf32>
    %1 = arith.truncf %0 : vector<8x64xf32> to vector<8x64xbf16>
    %c0_1 = arith.constant 0 : index
    %c0_2 = arith.constant 0 : index
    %2 = vector.load %arg3[%c0_1, %c0_2] : memref<64x128xbf16, #tpu.memory_space<vmem>>, vector<64x128xbf16>
    %cst = arith.constant dense<0.000000e+00> : vector<8x128xf32>
    %3 = tpu.matmul %1, %2, %cst {dimension_numbers = #tpu.dot_dimension_numbers<[1], [0], [0], [1], [0, 0, 1, 1], [], []>} : vector<8x64xbf16>, vector<64x128xbf16>, vector<8x128xf32> -> vector<8x128xf32>
    %c0_3 = arith.constant 0 : index
    %c0_4 = arith.constant 0 : index
    %4 = vector.load %arg4[%c0_3, %c0_4] : memref<1x128xf32, #tpu.memory_space<vmem>>, vector<1x128xf32>
    %5 = vector.broadcast %4 : vector<1x128xf32> to vector<8x128xf32>
    %6 = arith.addf %3, %5 : vector<8x128xf32>
    %7 = vector.extract_strided_slice %6 {offsets = [0, 0], sizes = [8, 96], strides = [1, 1]} : vector<8x128xf32> to vector<8x96xf32>
    %8 = arith.negf %7 : vector<8x96xf32>
    %9 = math.exp %8 : vector<8x96xf32>
    %cst_5 = arith.constant 1.000000e+00 : f32
    %10 = vector.broadcast %cst_5 : f32 to vector<8x96xf32>
    %11 = arith.addf %10, %9 : vector<8x96xf32>
    %12 = arith.divf %10, %11 : vector<8x96xf32>
    %13 = vector.extract_strided_slice %6 {offsets = [0, 96], sizes = [8, 32], strides = [1, 1]} : vector<8x128xf32> to vector<8x32xf32>
    %14 = math.tanh %13 : vector<8x32xf32>
    %15 = vector.extract_strided_slice %12 {offsets = [0, 0], sizes = [8, 32], strides = [1, 1]} : vector<8x96xf32> to vector<8x32xf32>
    %16 = vector.extract_strided_slice %12 {offsets = [0, 32], sizes = [8, 32], strides = [1, 1]} : vector<8x96xf32> to vector<8x32xf32>
    %17 = vector.extract_strided_slice %12 {offsets = [0, 64], sizes = [8, 32], strides = [1, 1]} : vector<8x96xf32> to vector<8x32xf32>
    %c0_6 = arith.constant 0 : index
    %c0_7 = arith.constant 0 : index
    %18 = vector.load %arg2[%c0_6, %c0_7] : memref<8x32xf32, #tpu.memory_space<vmem>>, vector<8x32xf32>
    %19 = arith.mulf %15, %18 : vector<8x32xf32>
    %20 = arith.mulf %16, %14 : vector<8x32xf32>
    %21 = arith.addf %19, %20 : vector<8x32xf32>
    %22 = math.tanh %21 : vector<8x32xf32>
    %23 = arith.mulf %17, %22 : vector<8x32xf32>
    %c0_8 = arith.constant 0 : index
    %c0_9 = arith.constant 0 : index
    %24 = vector.load %arg5[%c0_8, %c0_9] : memref<8x32xf32, #tpu.memory_space<vmem>>, vector<8x32xf32>
    tpu.vector_store %arg5[%c0_8, %c0_9], %23 {strides = array<i32>} : memref<8x32xf32, #tpu.memory_space<vmem>>, vector<8x32xf32>,
    %c0_10 = arith.constant 0 : index
    %c0_11 = arith.constant 0 : index
    %25 = vector.load %arg6[%c0_10, %c0_11] : memref<8x32xf32, #tpu.memory_space<vmem>>, vector<8x32xf32>
    tpu.vector_store %arg6[%c0_10, %c0_11], %21 {strides = array<i32>} : memref<8x32xf32, #tpu.memory_space<vmem>>, vector<8x32xf32>,
    return
  }
  func.func @transform_0(%arg0: i32) -> (i32, i32) {
    %c0_i32 = arith.constant 0 : i32
    %c0_i32_0 = arith.constant 0 : i32
    return %arg0, %c0_i32 : i32, i32
  }
  func.func @transform_1(%arg0: i32) -> (i32, i32) {
    %c0_i32 = arith.constant 0 : i32
    %c0_i32_0 = arith.constant 0 : i32
    return %arg0, %c0_i32 : i32, i32
  }
  func.func @transform_2(%arg0: i32) -> (i32, i32) {
    %c0_i32 = arith.constant 0 : i32
    %c0_i32_0 = arith.constant 0 : i32
    %c0_i32_1 = arith.constant 0 : i32
    return %c0_i32, %c0_i32_0 : i32, i32
  }
  func.func @transform_3(%arg0: i32) -> (i32, i32) {
    %c0_i32 = arith.constant 0 : i32
    %c0_i32_0 = arith.constant 0 : i32
    %c0_i32_1 = arith.constant 0 : i32
    return %c0_i32, %c0_i32_0 : i32, i32
  }
  func.func @transform_4(%arg0: i32) -> (i32, i32) {
    %c0_i32 = arith.constant 0 : i32
    %c0_i32_0 = arith.constant 0 : i32
    return %arg0, %c0_i32 : i32, i32
  }
  func.func @transform_5(%arg0: i32) -> (i32, i32) {
    %c0_i32 = arith.constant 0 : i32
    %c0_i32_0 = arith.constant 0 : i32
    return %arg0, %c0_i32 : i32, i32
  }
}

</mosaic_0001>

<bundles_post_ra>
// kernel: tpu_custom_call.1
= control target key start
LH: loop header
LB: loop body
LE: loop exit
PB: predicated region body
PF: predicated region fallthrough
CT: control target
= control target key end

     0   :  { %11 = vsyncpa [#allocation3], 0  ;;  %s480_s0 = inlined_call_operand.hbm [shape: f32[8,64], index: 0, kind: input, shape index: {}]   ;;  %s481_s1 = inlined_call_operand.hbm [shape: f32[8,32], index: 1, kind: input, shape index: {}]   ;;  %s482_s2 = inlined_call_operand.hbm [shape: bf16[64,128], index: 2, kind: input, shape index: {}]   ;;  %s483_s3 = inlined_call_operand.vmem [shape: f32[1,128], index: 3, kind: input, shape index: {}]   ;;  %s484_s4 = inlined_call_operand.hbm [shape: f32[8,32], index: 4, kind: output, shape index: {0}]   ;;  %s485_s5 = inlined_call_operand.hbm [shape: f32[8,32], index: 5, kind: output, shape index: {1}]  }
   0x1   :  { %12 = vsyncpa [#allocation6], 0 }
   0x2   :  { %13 = vsyncpa [#allocation4], 0 }
   0x3   :  { %14 = vsyncpa [#allocation10], 0  ;;  %s370_s18 = smov [#allocation5]   ;;  %s371_s20 = smov [#allocation2]  }
   0x4   :  { %s31_s19 = sshll.u32 %s370_s18, 4  ;;  %s21_s21 = sshll.u32 %s371_s20, 4  ;;  %s32_s19 = int_to_ptr.vmem [resolvable:$true] %s31_s19  ;;  %s22_s21 = int_to_ptr.vmem [resolvable:$true] %s21_s21 }
   0x5   :  { %s252_s24 = scalar_lea.hbm %s481_s1, 128 }
   0x6   :  { %p253_p0 = scmp.ne.s32.totalorder %s481_s1, %s252_s24  ;;  %p256_p1 = scmp.lt.u32.totalorder %s252_s24, %s481_s1 }
   0x8   :  { %p258_p2 = pnand %p256_p1, %p253_p0 }
   0xa   :  { %261 = shalt.err (!%p258_p2)
}
   0xb   :  { %s262_s29 = scalar_lea.vmem %s32_s19, 128  ;;  %p267_p4 = scmp.lt.s32.totalorder %s32_s19, %s32_s19 }
   0xc   :  { %p263_p3 = scmp.ne.s32.totalorder %s32_s19, %s262_s29  ;;  %p268_p5 = scmp.lt.s32.totalorder %s262_s29, %s262_s29 }
   0xe   :  { %p269_p6 = por %p268_p5, %p267_p4 }
  0x10   :  { %p270_p7 = pnand %p269_p6, %p263_p3 }
  0x12   :  { %273 = shalt.err (!%p270_p7)
}
  0x13   :  { %34 = dma.hbm_to_vmem [thread:$0]  %s481_s1, 128, %s32_s19, [#allocation6]  }
  0x14   :  { %s274_s9 = scalar_lea.hbm %s480_s0, 128 }
  0x15   :  { %p275_p8 = scmp.ne.s32.totalorder %s480_s0, %s274_s9  ;;  %p278_p9 = scmp.lt.u32.totalorder %s274_s9, %s480_s0 }
  0x17   :  { %p280_p10 = pnand %p278_p9, %p275_p8 }
  0x19   :  { %283 = shalt.err (!%p280_p10)
}
  0x1a   :  { %s284_s14 = scalar_lea.vmem %s22_s21, 128  ;;  %p289_p12 = scmp.lt.s32.totalorder %s22_s21, %s22_s21 }
  0x1b   :  { %p285_p11 = scmp.ne.s32.totalorder %s22_s21, %s284_s14  ;;  %p290_p13 = scmp.lt.s32.totalorder %s284_s14, %s284_s14 }
  0x1d   :  { %p291_p0 = por %p290_p13, %p289_p12 }
  0x1f   :  { %p292_p1 = pnand %p291_p0, %p285_p11 }
  0x21   :  { %295 = shalt.err (!%p292_p1)
}
  0x22   :  { %24 = dma.hbm_to_vmem [thread:$0]  %s480_s0, 128, %s22_s21, [#allocation3]  }
  0x23   :  { %s372_s16 = smov [#allocation7]   ;;  %s296_s20 = scalar_lea.hbm %s482_s2, 512 }
  0x24   :  { %s40_s17 = sshll.u32 %s372_s16, 4  ;;  %p297_p2 = scmp.ne.s32.totalorder %s482_s2, %s296_s20  ;;  %s41_s17 = int_to_ptr.vmem [resolvable:$true] %s40_s17 }
  0x25   :  { %p300_p3 = scmp.lt.u32.totalorder %s296_s20, %s482_s2 }
  0x27   :  { %p302_p4 = pnand %p300_p3, %p297_p2 }
  0x29   :  { %305 = shalt.err (!%p302_p4)
}
  0x2a   :  { %s306_s26 = scalar_lea.vmem %s41_s17, 512  ;;  %p311_p6 = scmp.lt.s32.totalorder %s41_s17, %s41_s17 }
  0x2b   :  { %p307_p5 = scmp.ne.s32.totalorder %s41_s17, %s306_s26  ;;  %p312_p7 = scmp.lt.s32.totalorder %s306_s26, %s306_s26 }
  0x2d   :  { %p313_p8 = por %p312_p7, %p311_p6 }
  0x2f   :  { %p314_p9 = pnand %p313_p8, %p307_p5 }
  0x31   :  { %317 = shalt.err (!%p314_p9)
}
  0x32   :  { %s373_s0 = smov 64   ;;  %s374_s21 = smov 4  }
  0x33   :  { %46 = dma.hbm_to_vmem [thread:$0]  %s482_s2, 512, %s41_s17, [#allocation6], %s373_s0, %s373_s0, %s374_s21  }
  0x34   :  { %362 = dma.done.wait [#allocation3], 128  }
  0x35   :  { %363 = vsyncadd [#allocation3], 4294967168 }
  0x36   :  { %364 = dma.done.wait [#allocation6], 640  }
  0x37   :  { %365 = vsyncadd [#allocation6], 4294966656  ;;  %v375_v0 = vmov 0.0   ;;  %vm376_vm0 = vmmov 0   ;;  %v240_v1 = vld [vmem:[#allocation7] sm:$0xff]   ;;  %v241_v2 = vld [vmem:[#allocation7 + $0x8] sm:$0xff]  }
  0x38   :  { %218 = vmatprep.subr.bf16.mxu0 %v375_v0  ;;  %226 = vmatprep.mubr.msk.bf16.mxu0 %vm376_vm0, %v375_v0  ;;  %v242_v3 = vld [vmem:[#allocation7 + $0x10] sm:$0xff]   ;;  %v243_v4 = vld [vmem:[#allocation7 + $0x18] sm:$0xff]   ;;  %vm100_vm1 = vcmask 523264   ;;  %s377_s30 = smov 96   ;;  %vm173_vm2 = vcmask 261120  }
  0x39   :  { %219 = vmatpush3.bf16.msra.mxu0 %v240_v1  ;;  %v59_v5 = vld [vmem:[#allocation2] sm:$0xff]  ;;  %v151_v20 = vld [vmem:[#allocation5] sm:$0xff] }
  0x3a   :  { %220 = vmatprep.subr.bf16.mxu0 %v375_v0  ;;  %v60_v6 = vpack.c.bf16 %v59_v5, %v59_v5  ;;  %v206_v7 = vld [vmem:[%s483_s3] ss:$0 sm:$0xff]  ;;  %s378_s3 = smov [#allocation9]  }
  0x3b   :  { %s192_s6 = sshll.u32 %s378_s3, 4  ;;  %s193_s6 = int_to_ptr.vmem [resolvable:$true] %s192_s6 }
  0x3c   :  { %s318_s7 = scalar_lea.vmem %s193_s6, 128  ;;  %p323_p11 = scmp.lt.s32.totalorder %s193_s6, %s193_s6 }
  0x3d   :  { %221 = vmatpush3.bf16.msra.mxu0 %v241_v2  ;;  %p319_p10 = scmp.ne.s32.totalorder %s193_s6, %s318_s7  ;;  %p324_p12 = scmp.lt.s32.totalorder %s318_s7, %s318_s7 }
  0x3e   :  { %222 = vmatprep.subr.bf16.mxu0 %v375_v0 }
  0x3f   :  { %p325_p13 = por %p324_p12, %p323_p11 }
  0x41   :  { %223 = vmatpush3.bf16.msra.mxu0 %v242_v3  ;;  %p326_p0 = pnand %p325_p13, %p319_p10 }
  0x42   :  { %224 = vmatprep.subr.bf16.mxu0 %v375_v0 }
  0x45   :  { %225 = vmatpush3.bf16.msra.mxu0 %v243_v4 }
  0x48   :  { %227 = vmatmul.mubr.msk.bf16.vlgmr.msra.gmra.mrb[0].mxu0 %vm100_vm1, %v60_v6 }
 0x11b   :  { %v138_v8 = vpop.f32.mrb[0].mxu0 }
 0x11c   :  { %v139_v9 = vadd.f32 %v206_v7, %v138_v8  ;;  %v228_v10 = vpop.f32.mrb[1].mxu0 }
 0x11d   :  { %v141_v11 = vpop.f32.mrb[2].mxu0 }
 0x11e   :  { %v229_v12 = vpop.f32.mrb[3].mxu0  ;;  %244 = vtanh.f32 %v139_v9  ;;  %v212_v14 = vmul.f32 -1.442695, %v139_v9 }
 0x120   :  { %246 = vpow2.f32 %v212_v14 }
 0x128   :  { %v245_v13 = vpop.eup %244 }
 0x129   :  { %154 = vrot.lane.b32.xlu0 %v245_v13, %s373_s0 }
 0x12a   :  { %v247_v15 = vpop.eup %246 }
 0x12b   :  { %v147_v16 = vadd.f32 1.0, %v247_v15 }
 0x12d   :  { %248 = vrcp.f32 %v147_v16 }
 0x137   :  { %v249_v17 = vpop.eup %248 }
 0x138   :  { %v152_v21 = vmul.f32 %v249_v17, %v151_v20 }
 0x19b   :  { %v155_v18 = vpop.permute.xlu0 %154 }
 0x19c   :  { %v157_v19 = vmul.f32 %v249_v17, %v155_v18 }
 0x19e   :  { %159 = vrot.lane.b32.xlu0 %v157_v19, %s377_s30 }
 0x210   :  { %v160_v22 = vpop.permute.xlu0 %159 }
 0x211   :  { %v162_v23 = vadd.f32 %v160_v22, %v152_v21 }
 0x213   :  { %250 = vtanh.f32 %v162_v23  ;;  %175 = vst.msk [vmem:[#allocation9] sm:$0xff] %vm173_vm2, %v162_v23 }
 0x21d   :  { %v251_v24 = vpop.eup %250 }
 0x21e   :  { %165 = vrot.lane.b32.xlu1 %v251_v24, %s373_s0 }
 0x21f   :  { %329 = shalt.err (!%p326_p0)
}
 0x220   :  { %s330_s10 = scalar_lea.hbm %s485_s5, 128 }
 0x221   :  { %p331_p1 = scmp.ne.s32.totalorder %s485_s5, %s330_s10  ;;  %p334_p2 = scmp.lt.u32.totalorder %s330_s10, %s485_s5 }
 0x223   :  { %p336_p3 = pnand %p334_p2, %p331_p1 }
 0x225   :  { %339 = shalt.err (!%p336_p3)
}
 0x226   :  { %195 = dma.vmem_to_hbm [thread:$0]  %s193_s6, 128, %s485_s5, [#allocation10]  }
 0x227   :  { %s379_s16 = smov [#allocation8]  }
 0x228   :  { %s182_s17 = sshll.u32 %s379_s16, 4  ;;  %s183_s17 = int_to_ptr.vmem [resolvable:$true] %s182_s17 }
 0x229   :  { %s340_s18 = scalar_lea.vmem %s183_s17, 128  ;;  %p345_p5 = scmp.lt.s32.totalorder %s183_s17, %s183_s17 }
 0x22a   :  { %p341_p4 = scmp.ne.s32.totalorder %s183_s17, %s340_s18  ;;  %p346_p6 = scmp.lt.s32.totalorder %s340_s18, %s340_s18 }
 0x22c   :  { %p347_p7 = por %p346_p6, %p345_p5 }
 0x22e   :  { %p348_p8 = pnand %p347_p7, %p341_p4 }
 0x290   :  { %v166_v25 = vpop.permute.xlu1 %165 }
 0x291   :  { %v168_v26 = vmul.f32 %v249_v17, %v166_v25 }
 0x293   :  { %170 = vrot.lane.b32.xlu1 %v168_v26, %s373_s0 }
 0x305   :  { %v171_v27 = vpop.permute.xlu1 %170 }
 0x306   :  { %174 = vst.msk [vmem:[#allocation8] sm:$0xff] %vm173_vm2, %v171_v27 }
 0x307   :  { %351 = shalt.err (!%p348_p8)
}
 0x308   :  { %s352_s5 = scalar_lea.hbm %s484_s4, 128 }
 0x309   :  { %p353_p9 = scmp.ne.s32.totalorder %s484_s4, %s352_s5  ;;  %p356_p10 = scmp.lt.u32.totalorder %s352_s5, %s484_s4 }
 0x30b   :  { %p358_p11 = pnand %p356_p10, %p353_p9 }
 0x30d   :  { %361 = shalt.err (!%p358_p11)
}
 0x30e   :  { %185 = dma.vmem_to_hbm [thread:$0]  %s183_s17, 128, %s484_s4, [#allocation4]  }
 0x30f   :  { %366 = dma.done.wait [#allocation4], 128  }
 0x310   :  { %367 = vsyncadd [#allocation4], 4294967168 }
 0x311   :  { %368 = dma.done.wait [#allocation10], 128  }
 0x312   :  { %369 = vsyncadd [#allocation10], 4294967168 }
 0x313   :  { %202 = vsyncpa [#allocation3], 1 }
 0x314   :  { %203 = vsyncpa [#allocation6], 1 }
 0x315   :  { %204 = vsyncpa [#allocation4], 1 }
 0x316   :  { %205 = vsyncpa [#allocation10], 1 }

</bundles_post_ra>
